<compile_context>
chip_gen: v6e
topology: v6e:2x2x1
jax: 0.10.0
libtpu: 0.0.40
codegen_flags: <defaults>
</compile_context>

<pallas_src>
import functools

import jax
import jax.numpy as jnp
from jax.experimental import pallas as pl
from jax.experimental.pallas import tpu as pltpu


def pam_v4_kernel(hw_true, x_ref, wab_ref, cab_ref, wv_ref, bv_ref, gamma_ref, o_ref):
    # x_ref : (1, C, HWp)   wab_ref : (2, C)   cab_ref : (2, 1)
    # wv_ref: (C, C)        bv_ref  : (C, 1)   gamma_ref (SMEM): (1, 1)
    # hw_true: static python int = H*W (true, unpadded); columns >= hw_true of x are 0.
    x = x_ref[0]                                        # (C, HWp) f32
    inv_hw = 1.0 / float(hw_true)

    # Energy row/col generators (lane-dense (1, HWp) vectors), one small matmul.
    ab = jnp.dot(wab_ref[...], x, preferred_element_type=jnp.float32) + cab_ref[...]
    a_row = ab[0:1, :]                                  # (1, HWp)
    b_row = ab[1:2, :]                                  # (1, HWp)

    # Lane reductions of x (plain and a-weighted). Zero-padded columns of x
    # contribute nothing, so these stay exact under HW padding.
    xs = jnp.sum(x, axis=-1, keepdims=True)             # (C, 1)
    xa = jnp.sum(x * a_row, axis=-1, keepdims=True)     # (C, 1)

    # sa = sum_{j < HW_true} a_row[j], computed analytically: avoids another XLU
    # cross-lane reduce and is immune to the padded (nonzero c_a) columns.
    sa = jnp.dot(wab_ref[0:1, :], xs, preferred_element_type=jnp.float32) \
        + cab_ref[0:1, :] * float(hw_true)              # (1, 1)

    # Fuse the two matvecs into a single (C,C)@(C,2) matmul. The (C,2) RHS
    # [xa | xs] is assembled with an iota-select (cheap, relayout-free).
    col = jax.lax.broadcasted_iota(jnp.int32, (x.shape[0], 2), 1)
    xasx = jnp.where(col == 0, xa, xs)                  # (C, 2): col0=xa, col1=xs
    vb = jnp.dot(wv_ref[...], xasx, preferred_element_type=jnp.float32)   # (C, 2)

    # Pre-scale by gamma/HW while still (C,1) vectors -> 3-op epilogue per element.
    scale = gamma_ref[0, 0] * inv_hw
    va_s = scale * (vb[:, 0:1] + bv_ref[...] * sa)                        # (C, 1)
    vs_s = scale * (vb[:, 1:2] + bv_ref[...] * float(hw_true))            # (C, 1)

    # out[c,j] = va_s[c] + vs_s[c]*b_row[j] + x[c,j]
    o_ref[0] = va_s + vs_s * b_row + x                  # (C, HWp)


def pam_module_v4(x, params):
    """x: (B, C, H, W) float32, params: dict of weights (1x1 conv kernels squeezed)."""
    B, C, H, W = x.shape
    HW = H * W
    ic = params["wq"].shape[0]

    # ---- host-side weight folding (tiny, one-time) ----
    wca = params["wcat"][:ic]                              # (ic,)
    wck = params["wcat"][ic:]                              # (ic,)
    w_a = wca @ params["wq"]                               # (C,)
    w_b = wck @ params["wk"]                               # (C,)
    wab = jnp.stack([w_a, w_b], axis=0)                    # (2, C)
    c_a = jnp.dot(wca, params["bq"])                       # scalar
    c_b = jnp.dot(wck, params["bk"])                       # scalar
    cab = jnp.stack([c_a, c_b]).reshape(2, 1)              # (2, 1)
    wv = params["wv"]                                      # (C, C)
    bv_col = params["bv"].reshape(C, 1)                    # (C, 1)
    gamma = params["gamma"].reshape(1, 1)                  # (1, 1) scalar -> SMEM

    # Lane-align HW to a multiple of 128 (zero-pad columns). The analytic sa in the
    # kernel keeps the math exact; padded output columns are sliced off below.
    HWp = ((HW + 127) // 128) * 128
    x_flat = x.reshape(B, C, HW)                           # NCHW row-major -> (B, C, HW)
    if HWp != HW:
        x_flat = jnp.pad(x_flat, ((0, 0), (0, 0), (0, HWp - HW)))

    def const_spec(shape):
        nd = len(shape)
        return pl.BlockSpec(shape, lambda b, _nd=nd: (0,) * _nd)

    # VMEM budget: double-buffered x block (in + out) + double-buffered Wv + slack.
    vmem_need = 16 * C * HWp + 8 * C * C + (2 << 20)
    try:
        vmem_phys = pltpu.get_tpu_info().vmem_capacity_bytes
    except Exception:
        vmem_phys = 64 << 20                               # v7x-safe fallback
    vmem_limit = int(min(max(vmem_need, 32 << 20), vmem_phys - (8 << 20)))

    flops = B * (4 * C * HWp         # (2,C)@(C,HWp)
                 + 3 * C * HWp       # weighted + plain lane reductions
                 + 4 * C * C         # fused (C,C)@(C,2)
                 + 3 * C * HWp)      # epilogue fma + residual
    bytes_accessed = 4 * (2 * B * C * HWp + C * C + 4 * C + 4)

    kernel = functools.partial(pam_v4_kernel, HW)

    out_flat = pl.pallas_call(
        kernel,
        out_shape=jax.ShapeDtypeStruct((B, C, HWp), x.dtype),
        grid_spec=pltpu.PrefetchScalarGridSpec(
            num_scalar_prefetch=0,
            grid=(B,),
            in_specs=[
                pl.BlockSpec((1, C, HWp), lambda b: (b, 0, 0)),       # x (streamed once)
                const_spec((2, C)),                                    # folded [w_a; w_b]
                const_spec((2, 1)),                                    # folded [c_a; c_b]
                const_spec((C, C)),                                    # Wv
                const_spec((C, 1)),                                    # bv
                pl.BlockSpec(memory_space=pltpu.MemorySpace.SMEM),     # gamma scalar
            ],
            out_specs=pl.BlockSpec((1, C, HWp), lambda b: (b, 0, 0)),
        ),
        compiler_params=pltpu.CompilerParams(
            dimension_semantics=("parallel",),
            vmem_limit_bytes=vmem_limit),
        cost_estimate=pl.CostEstimate(
            flops=flops, transcendentals=0, bytes_accessed=bytes_accessed),
    )(x_flat, wab, cab, wv, bv_col, gamma)

    if HWp != HW:
        out_flat = out_flat[..., :HW]
    return out_flat.reshape(B, C, H, W)


def pam_reference(x, params):
    """Pure-JAX reference implementing the intended PyTorch semantics literally
    (broadcast, concat on channels, 1x1 conv, scaled attention, bmm, residual)."""
    B, C, H, W = x.shape
    HW = H * W
    ic = params["wq"].shape[0]
    hi = jax.lax.Precision.HIGHEST
    xf = x.reshape(B, C, HW)

    def conv1x1(w, b, t):
        y = jnp.einsum("oc,bcn->bon", w, t, precision=hi)
        return y + b[None, :, None]

    q = conv1x1(params["wq"], params["bq"], xf)            # (B, ic, HW)
    k = conv1x1(params["wk"], params["bk"], xf)            # (B, ic, HW)
    v = conv1x1(params["wv"], params["bv"], xf)            # (B, C, HW)

    q_b = jnp.broadcast_to(q[:, :, :, None], (B, ic, HW, HW))
    k_b = jnp.broadcast_to(k[:, :, None, :], (B, ic, HW, HW))
    cat = jnp.concatenate([q_b, k_b], axis=1)              # (B, 2*ic, HW, HW)
    energy = jnp.einsum("c,bcij->bij", params["wcat"], cat, precision=hi)  # (B, HW, HW)
    attention = energy / float(HW)
    out = jnp.einsum("bcn,bnm->bcm", v, attention, precision=hi)           # (B, C, HW)
    out = params["gamma"][0] * out + xf
    return out.reshape(B, C, H, W)


if __name__ == "__main__":
    B, C, H, W = 2, 16, 8, 8          # in_c=16 -> inter_c = 16 // 8 = 2
    ic = C // 8

    key = jax.random.PRNGKey(0)
    keys = jax.random.split(key, 8)
    s = 0.1
    params = {
        "wq": s * jax.random.normal(keys[0], (ic, C), jnp.float32),      # query_conv (1x1 squeezed)
        "bq": s * jax.random.normal(keys[1], (ic,), jnp.float32),
        "wk": s * jax.random.normal(keys[2], (ic, C), jnp.float32),      # key_conv
        "bk": s * jax.random.normal(keys[3], (ic,), jnp.float32),
        "wv": s * jax.random.normal(keys[4], (C, C), jnp.float32),       # value_conv
        "bv": s * jax.random.normal(keys[5], (C,), jnp.float32),
        "wcat": s * jax.random.normal(keys[6], (2 * ic,), jnp.float32),  # concat_conv (no bias)
        # __init__ sets gamma = 0 (which would make out == x exactly); use a
        # nonzero deterministic value so the attention path is actually exercised.
        "gamma": jnp.array([0.5], jnp.float32),
    }

    x = jax.random.normal(keys[7], (B, C, H, W), jnp.float32)

    y = pam_module_v4(x, params)
    y = jax.block_until_ready(y)

    y_ref = pam_reference(x, params)
    assert y.shape == (B, C, H, W)
    assert jnp.allclose(y, y_ref, rtol=1e-3, atol=1e-3), (
        float(jnp.max(jnp.abs(y - y_ref))))

    print("KERNEL_OK")
</pallas_src>

<mosaic_0001>
module attributes {stable_mosaic.version = 11 : i64} {
  func.func @pam_v4_kernel(%arg0: i32, %arg1: memref<1x16x128xf32, #tpu.memory_space<vmem>>, %arg2: memref<2x16xf32, #tpu.memory_space<vmem>>, %arg3: memref<2x1xf32, #tpu.memory_space<vmem>>, %arg4: memref<16x16xf32, #tpu.memory_space<vmem>>, %arg5: memref<16x1xf32, #tpu.memory_space<vmem>>, %arg6: memref<1x1xf32, #tpu.memory_space<smem>>, %arg7: memref<1x16x128xf32, #tpu.memory_space<vmem>>) attributes {dimension_semantics = [#tpu.dimension_semantics<parallel>], iteration_bounds = array<i64: 2>, scalar_prefetch = 0 : i64, scratch_operands = 0 : i64, tpu.core_type = #tpu.core_type<tc>, window_params = [{transform_indices = @transform_0, window_bounds = array<i64: 1, 16, 128>}, {pipeline_mode = #tpu.pipeline_mode<synchronous>, transform_indices = @transform_1, window_bounds = array<i64: 2, 16>}, {pipeline_mode = #tpu.pipeline_mode<synchronous>, transform_indices = @transform_2, window_bounds = array<i64: 2, 1>}, {pipeline_mode = #tpu.pipeline_mode<synchronous>, transform_indices = @transform_3, window_bounds = array<i64: 16, 16>}, {pipeline_mode = #tpu.pipeline_mode<synchronous>, transform_indices = @transform_4, window_bounds = array<i64: 16, 1>}, {transform_indices = @transform_5, window_bounds = array<i64: 1, 1>}, {transform_indices = @transform_6, window_bounds = array<i64: 1, 16, 128>}]} {
    %c0 = arith.constant 0 : index
    %c0_0 = arith.constant 0 : index
    %c0_1 = arith.constant 0 : index
    %0 = vector.load %arg1[%c0, %c0_0, %c0_1] : memref<1x16x128xf32, #tpu.memory_space<vmem>>, vector<1x16x128xf32>
    %1 = vector.shape_cast %0 : vector<1x16x128xf32> to vector<16x128xf32>
    %c0_2 = arith.constant 0 : index
    %c0_3 = arith.constant 0 : index
    %2 = vector.load %arg2[%c0_2, %c0_3] : memref<2x16xf32, #tpu.memory_space<vmem>>, vector<2x16xf32>
    %cst = arith.constant dense<0.000000e+00> : vector<2x128xf32>
    %3 = tpu.matmul %2, %1, %cst {dimension_numbers = #tpu.dot_dimension_numbers<[1], [0], [0], [1], [0, 0, 1, 1], [], []>} : vector<2x16xf32>, vector<16x128xf32>, vector<2x128xf32> -> vector<2x128xf32>
    %c0_4 = arith.constant 0 : index
    %c0_5 = arith.constant 0 : index
    %4 = vector.load %arg3[%c0_4, %c0_5] : memref<2x1xf32, #tpu.memory_space<vmem>>, vector<2x1xf32>
    %5 = vector.broadcast %4 : vector<2x1xf32> to vector<2x128xf32>
    %6 = arith.addf %3, %5 : vector<2x128xf32>
    %7 = vector.extract_strided_slice %6 {offsets = [0, 0], sizes = [1, 128], strides = [1, 1]} : vector<2x128xf32> to vector<1x128xf32>
    %8 = vector.extract_strided_slice %6 {offsets = [1, 0], sizes = [1, 128], strides = [1, 1]} : vector<2x128xf32> to vector<1x128xf32>
    %cst_6 = arith.constant dense<0.000000e+00> : vector<16xf32>
    %9 = vector.multi_reduction <add>, %1, %cst_6 [1] : vector<16x128xf32> to vector<16xf32>
    %10 = vector.shape_cast %9 : vector<16xf32> to vector<16x1xf32>
    %11 = vector.broadcast %7 : vector<1x128xf32> to vector<16x128xf32>
    %12 = arith.mulf %1, %11 : vector<16x128xf32>
    %cst_7 = arith.constant dense<0.000000e+00> : vector<16xf32>
    %13 = vector.multi_reduction <add>, %12, %cst_7 [1] : vector<16x128xf32> to vector<16xf32>
    %14 = vector.shape_cast %13 : vector<16xf32> to vector<16x1xf32>
    %c0_8 = arith.constant 0 : index
    %c0_9 = arith.constant 0 : index
    %15 = vector.load %arg2[%c0_8, %c0_9] : memref<2x16xf32, #tpu.memory_space<vmem>>, vector<1x16xf32>
    %cst_10 = arith.constant dense<0.000000e+00> : vector<1x1xf32>
    %16 = tpu.matmul %15, %10, %cst_10 {dimension_numbers = #tpu.dot_dimension_numbers<[1], [0], [0], [1], [0, 0, 1, 1], [], []>} : vector<1x16xf32>, vector<16x1xf32>, vector<1x1xf32> -> vector<1x1xf32>
    %c0_11 = arith.constant 0 : index
    %c0_12 = arith.constant 0 : index
    %17 = vector.load %arg3[%c0_11, %c0_12] : memref<2x1xf32, #tpu.memory_space<vmem>>, vector<1x1xf32>
    %cst_13 = arith.constant 6.400000e+01 : f32
    %18 = vector.broadcast %cst_13 : f32 to vector<1x1xf32>
    %19 = arith.mulf %17, %18 : vector<1x1xf32>
    %20 = arith.addf %16, %19 : vector<1x1xf32>
    %21 = tpu.iota {dimensions = array<i32: 1>} : vector<16x2xi32>
    %c0_i32 = arith.constant 0 : i32
    %22 = vector.broadcast %c0_i32 : i32 to vector<16x2xi32>
    %23 = arith.cmpi eq, %21, %22 : vector<16x2xi32>
    %24 = vector.shape_cast %14 : vector<16x1xf32> to vector<16x1xf32>
    %25 = vector.broadcast %24 : vector<16x1xf32> to vector<16x2xf32>
    %26 = vector.shape_cast %10 : vector<16x1xf32> to vector<16x1xf32>
    %27 = vector.broadcast %26 : vector<16x1xf32> to vector<16x2xf32>
    %28 = arith.select %23, %25, %27 : vector<16x2xi1>, vector<16x2xf32>
    %c0_14 = arith.constant 0 : index
    %c0_15 = arith.constant 0 : index
    %29 = vector.load %arg4[%c0_14, %c0_15] : memref<16x16xf32, #tpu.memory_space<vmem>>, vector<16x16xf32>
    %cst_16 = arith.constant dense<0.000000e+00> : vector<16x2xf32>
    %30 = tpu.matmul %29, %28, %cst_16 {dimension_numbers = #tpu.dot_dimension_numbers<[1], [0], [0], [1], [0, 0, 1, 1], [], []>} : vector<16x16xf32>, vector<16x2xf32>, vector<16x2xf32> -> vector<16x2xf32>
    %c0_17 = arith.constant 0 : index
    %c0_18 = arith.constant 0 : index
    %31 = memref.load %arg6[%c0_17, %c0_18] : memref<1x1xf32, #tpu.memory_space<smem>>
    %cst_19 = arith.constant 1.562500e-02 : f32
    %32 = arith.mulf %31, %cst_19 : f32
    %33 = vector.extract_strided_slice %30 {offsets = [0, 0], sizes = [16, 1], strides = [1, 1]} : vector<16x2xf32> to vector<16x1xf32>
    %c0_20 = arith.constant 0 : index
    %c0_21 = arith.constant 0 : index
    %34 = vector.load %arg5[%c0_20, %c0_21] : memref<16x1xf32, #tpu.memory_space<vmem>>, vector<16x1xf32>
    %35 = vector.broadcast %20 : vector<1x1xf32> to vector<16x1xf32>
    %36 = arith.mulf %34, %35 : vector<16x1xf32>
    %37 = arith.addf %33, %36 : vector<16x1xf32>
    %38 = vector.broadcast %32 : f32 to vector<16x1xf32>
    %39 = arith.mulf %38, %37 : vector<16x1xf32>
    %40 = vector.extract_strided_slice %30 {offsets = [0, 1], sizes = [16, 1], strides = [1, 1]} : vector<16x2xf32> to vector<16x1xf32>
    %c0_22 = arith.constant 0 : index
    %c0_23 = arith.constant 0 : index
    %41 = vector.load %arg5[%c0_22, %c0_23] : memref<16x1xf32, #tpu.memory_space<vmem>>, vector<16x1xf32>
    %cst_24 = arith.constant 6.400000e+01 : f32
    %42 = vector.broadcast %cst_24 : f32 to vector<16x1xf32>
    %43 = arith.mulf %41, %42 : vector<16x1xf32>
    %44 = arith.addf %40, %43 : vector<16x1xf32>
    %45 = vector.broadcast %32 : f32 to vector<16x1xf32>
    %46 = arith.mulf %45, %44 : vector<16x1xf32>
    %47 = vector.broadcast %46 : vector<16x1xf32> to vector<16x128xf32>
    %48 = vector.broadcast %8 : vector<1x128xf32> to vector<16x128xf32>
    %49 = arith.mulf %47, %48 : vector<16x128xf32>
    %50 = vector.broadcast %39 : vector<16x1xf32> to vector<16x128xf32>
    %51 = arith.addf %50, %49 : vector<16x128xf32>
    %52 = arith.addf %51, %1 : vector<16x128xf32>
    %c0_25 = arith.constant 0 : index
    %c0_26 = arith.constant 0 : index
    %c0_27 = arith.constant 0 : index
    %53 = vector.load %arg7[%c0_25, %c0_26, %c0_27] : memref<1x16x128xf32, #tpu.memory_space<vmem>>, vector<1x16x128xf32>
    %54 = vector.shape_cast %53 : vector<1x16x128xf32> to vector<16x128xf32>
    %55 = vector.shape_cast %52 : vector<16x128xf32> to vector<1x16x128xf32>
    tpu.vector_store %arg7[%c0_25, %c0_26, %c0_27], %55 {strides = array<i32>} : memref<1x16x128xf32, #tpu.memory_space<vmem>>, vector<1x16x128xf32>,
    return
  }
  func.func @transform_0(%arg0: i32) -> (i32, i32, i32) {
    %c0_i32 = arith.constant 0 : i32
    %c0_i32_0 = arith.constant 0 : i32
    %c0_i32_1 = arith.constant 0 : i32
    return %arg0, %c0_i32, %c0_i32_0 : i32, i32, i32
  }
  func.func @transform_1(%arg0: i32) -> (i32, i32) {
    %c0_i32 = arith.constant 0 : i32
    %c0_i32_0 = arith.constant 0 : i32
    %c0_i32_1 = arith.constant 0 : i32
    return %c0_i32, %c0_i32_0 : i32, i32
  }
  func.func @transform_2(%arg0: i32) -> (i32, i32) {
    %c0_i32 = arith.constant 0 : i32
    %c0_i32_0 = arith.constant 0 : i32
    %c0_i32_1 = arith.constant 0 : i32
    return %c0_i32, %c0_i32_0 : i32, i32
  }
  func.func @transform_3(%arg0: i32) -> (i32, i32) {
    %c0_i32 = arith.constant 0 : i32
    %c0_i32_0 = arith.constant 0 : i32
    %c0_i32_1 = arith.constant 0 : i32
    return %c0_i32, %c0_i32_0 : i32, i32
  }
  func.func @transform_4(%arg0: i32) -> (i32, i32) {
    %c0_i32 = arith.constant 0 : i32
    %c0_i32_0 = arith.constant 0 : i32
    %c0_i32_1 = arith.constant 0 : i32
    return %c0_i32, %c0_i32_0 : i32, i32
  }
  func.func @transform_5(%arg0: i32) -> (i32, i32) {
    %c0_i32 = arith.constant 0 : i32
    %c0_i32_0 = arith.constant 0 : i32
    %c0_i32_1 = arith.constant 0 : i32
    return %c0_i32, %c0_i32_0 : i32, i32
  }
  func.func @transform_6(%arg0: i32) -> (i32, i32, i32) {
    %c0_i32 = arith.constant 0 : i32
    %c0_i32_0 = arith.constant 0 : i32
    %c0_i32_1 = arith.constant 0 : i32
    return %arg0, %c0_i32, %c0_i32_0 : i32, i32, i32
  }
}

</mosaic_0001>

<bundles_post_ra>
// kernel: tpu_custom_call.1
= control target key start
LH: loop header
LB: loop body
LE: loop exit
PB: predicated region body
PF: predicated region fallthrough
CT: control target
= control target key end

     0   :  { %s1139_s0 = inlined_call_operand.hbm [shape: f32[2,16,128], index: 0, kind: input, shape index: {}]   ;;  %s1140_s1 = inlined_call_operand.vmem [shape: f32[2,16], index: 1, kind: input, shape index: {}]   ;;  %s1141_s2 = inlined_call_operand.vmem [shape: f32[2,1], index: 2, kind: input, shape index: {}]   ;;  %s1142_s3 = inlined_call_operand.vmem [shape: f32[16,16], index: 3, kind: input, shape index: {}]   ;;  %s1143_s4 = inlined_call_operand.vmem [shape: f32[16,1], index: 4, kind: input, shape index: {}]   ;;  %s1144_s5 = inlined_call_operand.<no memory space> [shape: f32[1,1], index: 5, kind: input, shape index: {}]   ;;  %s1145_s6 = inlined_call_operand.hbm [shape: f32[2,16,128], index: 6, kind: output, shape index: {}]  }
   0x1   :  { %11 = sst [smem:[#allocation2]] %s1144_s5 }
   0x2   :  { %12 = vsyncpa [#allocation4], 0 }
   0x3   :  { %14 = vsyncpa [#allocation4 + $0x1], 0 }
   0x4   :  { %15 = vsyncpa [#allocation5], 0 }
   0x5   :  { %17 = vsyncpa [#allocation5 + $0x1], 0  ;;  %s934_s23 = smov 0   ;;  %s936_s24 = smov 0  }
   0x6   :  { %s938_s25 = smov 0   ;;  %s940_s26 = smov 0  }
   0x7 LB: > { %s955_s5 = sadd.s32 4294967295, %s883_s26   ;;  %s680_s27 = sadd.s32 4294967294, %s883_s26   ;;  %s883_s26 = sphi %s940_s26, %s1160_s26   ;;  %s879_s25 = sphi %s938_s25, %s1159_s25   ;;  %s875_s24 = sphi %s936_s24, %s1158_s24   ;;  %s871_s23 = sphi %s934_s23, %s1157_s23  }
   0x8   : > { %s959_s28 = sadd.s32 1, %s883_s26   ;;  %s30_s29 = sadd.s32 1, %s879_s25 }
   0x9   : > { %s27_s30 = ssub.s32 %s883_s26, %s959_s28  ;;  %p37_p0 = scmp.ne.s32.totalorder %s879_s25, %s875_s24 }
   0xa   : > { %p28_p1 = scmp.eq.s32.totalorder %s27_s30, 0  ;;  %p38_p2 = scmp.eq.s32.totalorder %s883_s26, 0 }
   0xb   : > { %p43_p3 = scmp.ne.s32.totalorder %s875_s24, %s871_s23  ;;  %p44_p4 = scmp.eq.s32.totalorder %s955_s5, 0 }
   0xc   : > { %s971_s7 = scalar_select %p28_p1, %s879_s25, %s30_s29  }
   0xd   : > { %p973_p5 = por %p38_p2, %p37_p0  ;;  %p977_p6 = por %p44_p4, %p43_p3 }
   0xe   : > { %p172_p7 = scmp.eq.s32.totalorder %s955_s5, 1  ;;  %p178_p8 = scmp.eq.s32.totalorder %s680_s27, 1 }
   0xf   : > { %s1149_s9 = scalar_select %p977_p6, 1, 0 }
  0x10   : > { %p743_p10 = scmp.lt.s32.totalorder %s883_s26, 2  ;;  %p984_p11 = por %p172_p7, %p37_p0 }
  0x11   : > { %p988_p12 = por %p178_p8, %p43_p3  ;;  %s213_s12 = sand.u32 1, %s879_s25  }
  0x12   : > { %s1150_s10 = scalar_select %p984_p11, 1, 0 }
  0x13   : > { %s1151_s11 = scalar_select %p988_p12, 1, 0 }
  0x14   : > { %s698_s13 = sshll.u32 %s883_s26, 8  ;;  %s683_s14 = sshll.u32 %s213_s12, 4 }
  0x15   : > { %s997_s17 = scalar_lea.hbm %s1139_s0, %s698_s13  ;;  %s217_s18 = scalar_lea.vmem [#allocation3], %s683_s14 }
  0x16   : > { %s224_s19 = sshll.u32 %s217_s18, 4  ;;  %p1001_p13 = pnand %p743_p10, %p973_p5  ;;  %s1005_s19 = int_to_ptr.vmem [resolvable:$true] %s224_s19 }
  0x17   : > { %s1007_s21 = scalar_lea.sflag [#allocation4], %s213_s12  ;;  %s791_s22 = scalar_lea.hbm %s997_s17, 256 }
  0x18   : > { %p792_p0 = scmp.ne.s32.totalorder %s997_s17, %s791_s22  ;;  %p793_p1 = pneg %p1001_p13 }
  0x19   : > { %s796_s30 = scalar_lea.hbm %s1139_s0, 512  ;;  %p797_p4 = scmp.lt.s32.totalorder %s997_s17, %s1139_s0 }
  0x1a   : > { %p794_p2 = pnand %p793_p1, %p792_p0  ;;  %p798_p5 = scmp.lt.s32.totalorder %s796_s30, %s791_s22 }
  0x1c   : > { %p795_p3 = pneg %p794_p2  ;;  %p799_p7 = por %p798_p5, %p797_p4 }
  0x1e   : > { %p800_p8 = pnand %p799_p7, %p795_p3 }
  0x20   : > { %803 = shalt.err (!%p800_p8)
}
  0x21   : > { %s804_s12 = scalar_lea.vmem %s1005_s19, 256  ;;  %s885_s14 = smov [#allocation3]  }
  0x22   : > { %p805_p10 = scmp.ne.s32.totalorder %s1005_s19, %s804_s12  ;;  %s809_s15 = sshll.u32 %s885_s14, 4  ;;  %s810_s15 = int_to_ptr.vmem [resolvable:$false] %s809_s15 }
  0x23   : > { %s811_s16 = scalar_lea.vmem %s810_s15, 512  ;;  %p812_p2 = scmp.lt.s32.totalorder %s1005_s19, %s810_s15 }
  0x24   : > { %p807_p9 = pnand %p805_p10, %p793_p1  ;;  %p813_p12 = scmp.lt.s32.totalorder %s811_s16, %s804_s12 }
  0x26   : > { %p808_p0 = pneg %p807_p9  ;;  %p814_p11 = por %p813_p12, %p812_p2 }
  0x28   : > { %p815_p6 = pnand %p814_p11, %p808_p0 }
  0x2a   : > { %818 = shalt.err (!%p815_p6)
}
  0x2b   : > { %s886_s18 = smov 128   ;;  %s887_s22 = smov 8  }
  0x2c   : > { %738 = dma.hbm_to_vmem [thread:$0]  (!%p1001_p13), %s997_s17, 256, %s1005_s19, %s1007_s21, %s886_s18, %s886_s18, %s887_s22  }
  0x2d   : > { %p686_p9 = scmp.ge.s32.totalorder %s883_s26, 1  ;;  %p232_p1 = scmp.lt.s32.totalorder %s883_s26, 3 }
  0x2f   : > { %p233_p3 = pnand %p686_p9, %p232_p1 }
  0x30   : > { %s1031_s27 = sand.u32 (!%p233_p3), 1, %s875_s24   ;;  %p1153_p6 = scmp.ne.s32.totalorder (!%p233_p3), %s1149_s9, 0 }
  0x31   : > { %236 = sbr.rel (%p233_p3) target bundleno = 755 (0x2f3), region = 44  ;;  %s687_s29 = sshll.u32 (!%p233_p3), %s1031_s27, 4 }
  0x32   : > { %s239_s30 = scalar_lea.sflag (!%p233_p3), [#allocation4], %s1031_s27  ;;  %s242_s8 = scalar_lea.vmem (!%p233_p3), [#allocation3], %s687_s29 }
  0x36   : > { %862 = dma.done.wait (%p1153_p6), %s239_s30, 256  }
  0x37   : > { %864 = vsyncadd (%p1153_p6), %s239_s30, 4294967040  ;;  %v888_v0 = vmov 0.0   ;;  %vm889_vm0 = vmmov 0   ;;  %v890_v1 = vmov 0   ;;  %v1042_v2 = vld [vmem:[%s242_s8 + $0x8] sm:$0xff]  ;;  %v1044_v3 = vld [vmem:[%s242_s8] sm:$0xff]  ;;  %v358_v9 = vlaneseq }
  0x38   : > { %710 = vmatprep.subr.mxu0 %v888_v0  ;;  %714 = vmatprep.mubr.msk.f32.mxu0 %vm889_vm0, %v888_v0  ;;  %v273_v4 = vld [vmem:[%s1140_s1] sm:$0x3]  ;;  %vm280_vm1 = vcmask 130048   ;;  %v535_v24 = vld [vmem:[%s1143_s4 + $0x8] sm:$0xff]  ;;  %s891_s30 = smov 1   ;;  %v892_v34 = vmov 1  }
  0x39   : > { %786 = vset.pattern.permute.xlu0 %v890_v1  ;;  %717 = vmatprep.subr.mxu1 %v888_v0  ;;  %v274_v5 = vld [vmem:[%s1141_s2] sm:$0x3]  ;;  %v359_v10 = vshrl.u32 %v358_v9, 7  ;;  %v548_v25 = vmul.f32 64.0, %v535_v24  ;;  %v445_v26 = vand.u32 127, %v358_v9  ;;  %v450_v31 = vld [vmem:[%s1142_s3 + $0x8] sm:$0xff] }
  0x3a   : > { %721 = vmatprep.mubr.msk.f32.mxu1 %vm889_vm0, %v888_v0  ;;  %711 = vmatpush3.msra.mxu0 %v1042_v2  ;;  %v368_v20 = vld [vmem:[%s1140_s1] sm:$0x1]  ;;  %s532_s19 = sld [smem:[#allocation2]]  ;;  %s270_s13 = scalar_lea.vmem [#allocation6], %s687_s29 }
  0x3b   : > { %354 = vadd.xlane.f32.xlu1 %v1044_v3  ;;  %712 = vmatprep.subr.mxu0 %v888_v0  ;;  %v360_v11 = vsub.s32 0, %v359_v10  ;;  %v573_v12 = vsub.s32 1, %v359_v10  ;;  %v449_v21 = vld [vmem:[%s1142_s3] sm:$0xff]  ;;  %vm446_vm2 = vcmp.eq.s32.totalorder %v445_v26, 0  ;;  %s607_s12 = sshll.u32 %s270_s13, 4  ;;  %s699_s14 = sshll.u32 %s955_s5, 8  ;;  %s1090_s12 = int_to_ptr.vmem [resolvable:$true] %s607_s12 }
  0x3c   : > { %277 = vperm.xlu0 %786, %v274_v5   ;;  %713 = vmatpush3.msra.mxu0 %v1044_v3  ;;  %v534_v22 = vld [vmem:[%s1143_s4] sm:$0xff]  ;;  %s1095_s18 = scalar_lea.hbm %s1145_s6, %s699_s14  ;;  %s594_s29 = scalar_lea.sflag [#allocation5], %s1031_s27 }
  0x3d   : > { %715 = vmatmul.mubr.msk.f32.vlgmr.msra.gmra.mxu0 %vm280_vm1, %v273_v4  ;;  %v547_v23 = vmul.f32 64.0, %v534_v22  ;;  %787 = vset.pattern.permute.xlu1 %v892_v34  ;;  %v369_v35 = vld [vmem:[%s1141_s2] sm:$0x1]  ;;  %s819_s22 = scalar_lea.vmem %s1090_s12, 256  ;;  %p1154_p12 = scmp.ne.s32.totalorder %s1150_s10, 0 }
  0x3e   : > { %728 = vmatprep.mubr.msk.f32.mxu0 %vm280_vm1, %v449_v21  ;;  %v370_v36 = vmul.f32 64.0, %v369_v35  ;;  %p820_p11 = scmp.ne.s32.totalorder %s1090_s12, %s819_s22  ;;  %s893_s5 = smov [#allocation6]  }
  0x40   : > { %788 = vset.pattern.permute.xlu0 %v892_v34  ;;  %s533_s21 = smul.f32 0.015625, %s532_s19  ;;  %p821_p13 = pnand %p820_p11, %p1154_p12 }
  0x42   : > { %v544_v42 = vstv %s533_s21  ;;  %p822_p4 = pneg %p821_p13 }
  0x5b   : > { %356 = vadd.xlane.f32.xlu0 %v1042_v2 }
  0xb7   : > { %v278_v6 = vpop.permute.xlu0 %277 }
  0xc4   : > { %v355_v8 = vpop.xlane.xlu1 %354 }
  0xe4   : > { %v357_v7 = vpop.xlane.xlu0 %356 }
  0xe5   : > { %718 = vmatpush3.msra.mxu1 %v357_v7 }
  0xe6   : > { %719 = vmatprep.subr.mxu1 %v888_v0 }
  0xe7   : > { %720 = vmatpush3.msra.mxu1 %v355_v8 }
  0xe8   : > { %722 = vmatmul.mubr.msk.f32.vlgmr.msra.gmra.mxu1 %vm280_vm1, %v368_v20 }
  0xfd   : > { %v350_v13 = vpop.f32.mrf.mxu0 }
  0xfe   : > { %v351_v14 = vadd.f32 %v350_v13, %v278_v6 }
  0xff   : > { %v716_v15 = vpop.f32.mrf.mxu0 }
 0x100   : > { %v361_v16 = vrot.slane %v351_v14, %v360_v11  ;;  %v1057_v17 = vrot.slane %v351_v14, %v573_v12 }
 0x102   : > { %v363_v18 = vmul.f32 %v361_v16, %v1042_v2  ;;  %v362_v19 = vmul.f32 %v361_v16, %v1044_v3 }
 0x104   : > { %366 = vadd.xlane.f32.xlu1 %v363_v18 }
 0x108   : > { %364 = vadd.xlane.f32.xlu1 %v362_v19 }
 0x119   : > { %551 = vrot.lane.b32.xlu1 %v547_v23, %s891_s30 }
 0x11d   : > { %553 = vrot.lane.b32.xlu1 %v548_v25, %s891_s30  ;;  %s823_s30 = sshll.u32 %s893_s5, 4  ;;  %s824_s30 = int_to_ptr.vmem [resolvable:$false] %s823_s30 }
 0x11e   : > { %s825_s8 = scalar_lea.vmem %s824_s30, 512  ;;  %p826_p5 = scmp.lt.s32.totalorder %s1090_s12, %s824_s30 }
 0x11f   : > { %p827_p7 = scmp.lt.s32.totalorder %s825_s8, %s819_s22 }
 0x121   : > { %p828_p8 = por %p827_p7, %p826_p5 }
 0x123   : > { %p829_p10 = pnand %p828_p8, %p822_p4 }
 0x18d   : > { %v367_v27 = vpop.xlane.xlu1 %366 }
 0x18e   : > { %v448_v28 = vsel %vm446_vm2, %v367_v27, %v357_v7 }
 0x18f   : > { %724 = vmatprep.subr.mxu0 %v448_v28 }
 0x190   : > { %725 = vmatpush3.msra.mxu0 %v448_v28 }
 0x191   : > { %v365_v29 = vpop.xlane.xlu1 %364 }
 0x192   : > { %v447_v30 = vsel %vm446_vm2, %v365_v29, %v355_v8 }
 0x193   : > { %726 = vmatprep.subr.mxu0 %v447_v30 }
 0x194   : > { %727 = vmatpush3.msra.mxu0 %v447_v30 }
 0x195   : > { %729 = vmatmul.mubr.msk.f32.vlgmr.msra.gmra.mxu0 %vm280_vm1, %v450_v31  ;;  %v552_v37 = vpop.permute.xlu1 %551 }
 0x199   : > { %v554_v39 = vpop.permute.xlu1 %553 }
 0x1a8   : > { %v440_v32 = vpop.f32.mrf.mxu1 }
 0x1a9   : > { %v441_v38 = vadd.f32 %v440_v32, %v370_v36 }
 0x1aa   : > { %v723_v33 = vpop.f32.mrf.mxu1 }
 0x1ab   : > { %v539_v40 = vrot.slane %v441_v38, %v360_v11 }
 0x1ad   : > { %v540_v45 = vmul.f32 %v539_v40, %v534_v22  ;;  %v541_v49 = vmul.f32 %v539_v40, %v535_v24 }
 0x255   : > { %v730_v41 = vpop.f32.mrf.mxu0 }
 0x256   : > { %v558_v43 = vadd.f32 %v730_v41, %v554_v39  ;;  %v543_v51 = vadd.f32 %v730_v41, %v541_v49 }
 0x257   : > { %v523_v44 = vpop.f32.mrf.mxu0 }
 0x258   : > { %v560_v46 = vmul.f32 %v558_v43, %v544_v42  ;;  %v557_v47 = vadd.f32 %v552_v37, %v523_v44  ;;  %v542_v50 = vadd.f32 %v540_v45, %v523_v44  ;;  %v546_v53 = vmul.f32 %v544_v42, %v543_v51 }
 0x25a   : > { %v559_v48 = vmul.f32 %v557_v47, %v544_v42  ;;  %568 = vperm.xlu0 %788, %v560_v46   ;;  %v545_v52 = vmul.f32 %v544_v42, %v542_v50 }
 0x25c   : > { %563 = vperm.xlu1 %787, %v559_v48  }
 0x25e   : > { %790 = vset.pattern.permute.xlu0 %v890_v1 }
 0x260   : > { %789 = vset.pattern.permute.xlu1 %v890_v1 }
 0x261   : > { %579 = vperm.xlu1 %789, %v545_v52  }
 0x265   : > { %584 = vperm.xlu1 %789, %v546_v53  }
 0x2d5   : > { %v569_v56 = vpop.permute.xlu0 %568 }
 0x2d6   : > { %v576_v59 = vmul.f32 %v1057_v17, %v569_v56 }
 0x2d7   : > { %v564_v54 = vpop.permute.xlu1 %563 }
 0x2d8   : > { %v575_v55 = vmul.f32 %v1057_v17, %v564_v54 }
 0x2dc   : > { %v580_v57 = vpop.permute.xlu1 %579 }
 0x2dd   : > { %v587_v58 = vadd.f32 %v580_v57, %v575_v55 }
 0x2df   : > { %v589_v60 = vadd.f32 %v587_v58, %v1044_v3 }
 0x2e0   : > { %v585_v61 = vpop.permute.xlu1 %584 }
 0x2e1   : > { %591 = vst [vmem:[%s270_s13] sm:$0xff] %v589_v60  ;;  %v588_v62 = vadd.f32 %v585_v61, %v576_v59 }
 0x2e3   : > { %v590_v63 = vadd.f32 %v588_v62, %v1042_v2 }
 0x2e5   : > { %592 = vst [vmem:[%s270_s13 + $0x8] sm:$0xff] %v590_v63 }
 0x2e6   : > { %832 = shalt.err (!%p829_p10)
}
 0x2e7   : > { %s833_s17 = scalar_lea.hbm %s1095_s18, 256  ;;  %s837_s20 = scalar_lea.hbm %s1145_s6, 512 }
 0x2e8   : > { %p834_p0 = scmp.ne.s32.totalorder %s1095_s18, %s833_s17  ;;  %p838_p1 = scmp.lt.s32.totalorder %s1095_s18, %s1145_s6 }
 0x2e9   : > { %p839_p3 = scmp.lt.s32.totalorder %s837_s20, %s833_s17 }
 0x2ea   : > { %p835_p2 = pnand %p834_p0, %p1154_p12 }
 0x2eb   : > { %p840_p6 = por %p839_p3, %p838_p1 }
 0x2ec   : > { %p836_p9 = pneg %p835_p2 }
 0x2ee   : > { %p841_p11 = pnand %p840_p6, %p836_p9 }
 0x2f0   : > { %844 = shalt.err (!%p841_p11)
}
 0x2f1   : > { %s894_s14 = smov 128   ;;  %s895_s15 = smov 8  }
 0x2f2   : > { %733 = dma.vmem_to_hbm [thread:$0]  (%p1154_p12), %s1090_s12, 256, %s1095_s18, %s594_s29, %s894_s14, %s894_s14, %s895_s15  }
 0x2f3 PF: > { %s622_s16 = sand.u32 1, %s871_s23   ;;  %p1155_p13 = scmp.ne.s32.totalorder %s1151_s11, 0 }
 0x2f4   : > { %p1156_p4 = scmp.ge.s32.totalorder %s883_s26, 2  ;;  %s623_s22 = scalar_lea.sflag [#allocation5], %s622_s16 }
 0x2f6   : > { %p740_p5 = pnand %p1156_p4, %p1155_p13 }
 0x2f8   : > { %p741_p7 = pneg %p740_p5 }
 0x2fa   : > { %866 = dma.done.wait (%p741_p7), %s623_s22, 256  }
 0x2fb   : > { %868 = vsyncadd (%p741_p7), %s623_s22, 4294967040  ;;  %p20_p8 = scmp.ge.s32.totalorder %s959_s28, 4   ;;  %s1157_s23 = smov %s875_s24 }
 0x2fc   : > { %s1158_s24 = smov %s879_s25  ;;  %s1159_s25 = smov %s971_s7 }
 0x2fd   : > { %s1160_s26 = smov %s959_s28  ;;  %22 = sbr.rel (!%p20_p8) target bundleno = 7 (0x7), region = 89 }
 0x302   :  { %628 = vsyncpa [#allocation4], 1 }
 0x303   :  { %630 = vsyncpa [#allocation4 + $0x1], 1 }
 0x304   :  { %631 = vsyncpa [#allocation5], 1 }
 0x305   :  { %633 = vsyncpa [#allocation5 + $0x1], 1 }

</bundles_post_ra>
